<compile_context>
chip_gen: v6e
topology: v6e:2x2x1
jax: 0.10.0
libtpu: 0.0.40
codegen_flags: <defaults>
</compile_context>

<pallas_src>
import jax
import jax.numpy as jnp
from jax.experimental import pallas as pl
from jax.experimental.pallas import tpu as pltpu


def _round_up(x, m):
    return ((x + m - 1) // m) * m


def _mlp_kernel(x_ref, w1_ref, b1_ref, w2_ref, b2_ref, o_ref):
    # Layer 1 on the MXU; f32 accumulation regardless of input dtype.
    h = jnp.dot(x_ref[...], w1_ref[...], preferred_element_type=jnp.float32)
    h = jnp.maximum(h + b1_ref[...], 0.0)          # (TB, H) bias + ReLU on the VPU (f32)
    # Layer 2 (N=1): keep it off the MXU. VPU multiply + XLU lane reduction.
    logit = jnp.sum(h * w2_ref[...], axis=-1, keepdims=True)   # (TB, 1)
    logit = logit + b2_ref[0, 0]                   # scalar bias from SMEM
    # Sigmoid: EUP exp + exact reciprocal (approx=False keeps 1e-5 accuracy).
    o_ref[...] = pl.reciprocal(1.0 + jnp.exp(-logit), approx=False)


def neural_net2_forward(x, w1, b1, w2, b2, *, block_batch=2048,
                        compute_dtype=jnp.float32):
    """x: (B, K) f32; w1: (K, H); b1: (1, H); w2: (1, H)  [= nn.Linear(H,1).weight];
    b2: (1, 1). Returns (B, 1) f32 probabilities.

    block_batch: batch tile size (rounded to a multiple of 8).
    compute_dtype: dtype fed to the MXU for x/w1 (use jnp.bfloat16 on v6e/v7x
    to halve HBM traffic; accumulation and elementwise math stay f32)."""
    B, K = x.shape
    H = w1.shape[1]
    assert w1.shape == (K, H) and b1.shape == (1, H)
    assert w2.shape == (1, H) and b2.shape == (1, 1)

    # Batch tile: multiple of 8 sublanes, capped at block_batch; pad B to it.
    tb = min(_round_up(block_batch, 8), _round_up(B, 8))
    padded_b = _round_up(B, tb)
    if padded_b != B:
        x = jnp.pad(x, ((0, padded_b - B), (0, 0)))
    num_tiles = padded_b // tb

    x_c = x.astype(compute_dtype)
    w1_c = w1.astype(compute_dtype)

    cost = pl.CostEstimate(
        flops=2 * padded_b * K * H + 2 * padded_b * H,
        transcendentals=padded_b,
        bytes_accessed=(x_c.size * x_c.dtype.itemsize
                        + w1_c.size * w1_c.dtype.itemsize
                        + (b1.size + w2.size + b2.size) * 4
                        + padded_b * 4),
    )

    out = pl.pallas_call(
        _mlp_kernel,
        out_shape=jax.ShapeDtypeStruct((padded_b, 1), jnp.float32),
        grid=(num_tiles,),
        in_specs=[
            pl.BlockSpec((tb, K), lambda i: (i, 0)),   # x: tiled over batch
            pl.BlockSpec((K, H), lambda i: (0, 0)),    # w1: resident
            pl.BlockSpec((1, H), lambda i: (0, 0)),    # b1: resident
            pl.BlockSpec((1, H), lambda i: (0, 0)),    # w2 row vector: resident
            pl.BlockSpec(memory_space=pltpu.MemorySpace.SMEM),  # b2 scalar
        ],
        out_specs=pl.BlockSpec((tb, 1), lambda i: (i, 0)),
        compiler_params=pltpu.CompilerParams(
            dimension_semantics=("parallel",),         # shard batch grid across TCs (v7x)
            vmem_limit_bytes=48 * 1024 * 1024,         # headroom under v7x's 64 MiB VMEM
        ),
        cost_estimate=cost,
    )(x_c, w1_c, b1, w2, b2)

    return out[:B]


if __name__ == "__main__":
    # Small, module-consistent shapes (NeuralNet2(input_size=32, hidden_size=64, num_classes unused)).
    batch = 8
    input_size = 32
    hidden_size = 64

    key = jax.random.PRNGKey(0)
    kx, kw1, kb1, kw2, kb2 = jax.random.split(key, 5)

    x = jax.random.normal(kx, (batch, input_size), dtype=jnp.float32)
    # nn.Linear layouts: w1 stored transposed as (in, out); w2 kept in native
    # PyTorch layout (out=1, in=H). Deterministic synthetic init.
    w1 = jax.random.normal(kw1, (input_size, hidden_size), dtype=jnp.float32) * 0.1
    b1 = jax.random.normal(kb1, (1, hidden_size), dtype=jnp.float32) * 0.1
    w2 = jax.random.normal(kw2, (1, hidden_size), dtype=jnp.float32) * 0.1
    b2 = jax.random.normal(kb2, (1, 1), dtype=jnp.float32) * 0.1

    def ref_fn(x_):
        return jax.nn.sigmoid(jnp.maximum(x_ @ w1 + b1, 0.0) @ w2.T + b2)

    # f32 path, tiny batch (single tile).
    y = jax.block_until_ready(neural_net2_forward(x, w1, b1, w2, b2))
    assert y.shape == (batch, 1)
    assert jnp.allclose(y, ref_fn(x), atol=1e-5, rtol=1e-5)

    # Exercise the batch grid + padding path (B not a multiple of the tile),
    # plus the bf16 matmul-input path recommended for v6e/v7x.
    big_batch = 300
    xb = jax.random.normal(jax.random.PRNGKey(1), (big_batch, input_size),
                           dtype=jnp.float32)
    yb = jax.block_until_ready(
        neural_net2_forward(xb, w1, b1, w2, b2,
                            block_batch=128, compute_dtype=jnp.bfloat16))
    assert yb.shape == (big_batch, 1)
    assert jnp.allclose(yb, ref_fn(xb), atol=2e-2, rtol=2e-2)

    print("KERNEL_OK")
</pallas_src>

<mosaic_0001>
module attributes {stable_mosaic.version = 11 : i64} {
  func.func @_mlp_kernel(%arg0: i32, %arg1: memref<8x32xf32, #tpu.memory_space<vmem>>, %arg2: memref<32x64xf32, #tpu.memory_space<vmem>>, %arg3: memref<1x64xf32, #tpu.memory_space<vmem>>, %arg4: memref<1x64xf32, #tpu.memory_space<vmem>>, %arg5: memref<1x1xf32, #tpu.memory_space<smem>>, %arg6: memref<8x1xf32, #tpu.memory_space<vmem>>) attributes {dimension_semantics = [#tpu.dimension_semantics<parallel>], iteration_bounds = array<i64: 1>, scalar_prefetch = 0 : i64, scratch_operands = 0 : i64, tpu.core_type = #tpu.core_type<tc>, window_params = [{transform_indices = @transform_0, window_bounds = array<i64: 8, 32>}, {pipeline_mode = #tpu.pipeline_mode<synchronous>, transform_indices = @transform_1, window_bounds = array<i64: 32, 64>}, {pipeline_mode = #tpu.pipeline_mode<synchronous>, transform_indices = @transform_2, window_bounds = array<i64: 1, 64>}, {pipeline_mode = #tpu.pipeline_mode<synchronous>, transform_indices = @transform_3, window_bounds = array<i64: 1, 64>}, {transform_indices = @transform_4, window_bounds = array<i64: 1, 1>}, {transform_indices = @transform_5, window_bounds = array<i64: 8, 1>}]} {
    %c0 = arith.constant 0 : index
    %c0_0 = arith.constant 0 : index
    %0 = vector.load %arg1[%c0, %c0_0] : memref<8x32xf32, #tpu.memory_space<vmem>>, vector<8x32xf32>
    %c0_1 = arith.constant 0 : index
    %c0_2 = arith.constant 0 : index
    %1 = vector.load %arg2[%c0_1, %c0_2] : memref<32x64xf32, #tpu.memory_space<vmem>>, vector<32x64xf32>
    %cst = arith.constant dense<0.000000e+00> : vector<8x64xf32>
    %2 = tpu.matmul %0, %1, %cst {dimension_numbers = #tpu.dot_dimension_numbers<[1], [0], [0], [1], [0, 0, 1, 1], [], []>} : vector<8x32xf32>, vector<32x64xf32>, vector<8x64xf32> -> vector<8x64xf32>
    %c0_3 = arith.constant 0 : index
    %c0_4 = arith.constant 0 : index
    %3 = vector.load %arg3[%c0_3, %c0_4] : memref<1x64xf32, #tpu.memory_space<vmem>>, vector<1x64xf32>
    %4 = vector.broadcast %3 : vector<1x64xf32> to vector<8x64xf32>
    %5 = arith.addf %2, %4 : vector<8x64xf32>
    %cst_5 = arith.constant 0.000000e+00 : f32
    %6 = vector.broadcast %cst_5 : f32 to vector<8x64xf32>
    %7 = arith.maximumf %5, %6 : vector<8x64xf32>
    %c0_6 = arith.constant 0 : index
    %c0_7 = arith.constant 0 : index
    %8 = vector.load %arg4[%c0_6, %c0_7] : memref<1x64xf32, #tpu.memory_space<vmem>>, vector<1x64xf32>
    %9 = vector.broadcast %8 : vector<1x64xf32> to vector<8x64xf32>
    %10 = arith.mulf %7, %9 : vector<8x64xf32>
    %cst_8 = arith.constant dense<0.000000e+00> : vector<8xf32>
    %11 = vector.multi_reduction <add>, %10, %cst_8 [1] : vector<8x64xf32> to vector<8xf32>
    %12 = vector.shape_cast %11 : vector<8xf32> to vector<8x1xf32>
    %c0_9 = arith.constant 0 : index
    %c0_10 = arith.constant 0 : index
    %13 = memref.load %arg5[%c0_9, %c0_10] : memref<1x1xf32, #tpu.memory_space<smem>>
    %14 = vector.broadcast %13 : f32 to vector<8x1xf32>
    %15 = arith.addf %12, %14 : vector<8x1xf32>
    %cst_11 = arith.constant 0.000000e+00 : f32
    %16 = vector.broadcast %cst_11 : f32 to vector<8x1xf32>
    %17 = arith.subf %16, %15 : vector<8x1xf32>
    %18 = math.exp %17 : vector<8x1xf32>
    %cst_12 = arith.constant 1.000000e+00 : f32
    %19 = vector.broadcast %cst_12 : f32 to vector<8x1xf32>
    %20 = arith.addf %19, %18 : vector<8x1xf32>
    %21 = tpu.reciprocal %20 : vector<8x1xf32> -> vector<8x1xf32>
    %c0_13 = arith.constant 0 : index
    %c0_14 = arith.constant 0 : index
    %22 = vector.load %arg6[%c0_13, %c0_14] : memref<8x1xf32, #tpu.memory_space<vmem>>, vector<8x1xf32>
    tpu.vector_store %arg6[%c0_13, %c0_14], %21 {strides = array<i32>} : memref<8x1xf32, #tpu.memory_space<vmem>>, vector<8x1xf32>,
    return
  }
  func.func @transform_0(%arg0: i32) -> (i32, i32) {
    %c0_i32 = arith.constant 0 : i32
    %c0_i32_0 = arith.constant 0 : i32
    return %arg0, %c0_i32 : i32, i32
  }
  func.func @transform_1(%arg0: i32) -> (i32, i32) {
    %c0_i32 = arith.constant 0 : i32
    %c0_i32_0 = arith.constant 0 : i32
    %c0_i32_1 = arith.constant 0 : i32
    return %c0_i32, %c0_i32_0 : i32, i32
  }
  func.func @transform_2(%arg0: i32) -> (i32, i32) {
    %c0_i32 = arith.constant 0 : i32
    %c0_i32_0 = arith.constant 0 : i32
    %c0_i32_1 = arith.constant 0 : i32
    return %c0_i32, %c0_i32_0 : i32, i32
  }
  func.func @transform_3(%arg0: i32) -> (i32, i32) {
    %c0_i32 = arith.constant 0 : i32
    %c0_i32_0 = arith.constant 0 : i32
    %c0_i32_1 = arith.constant 0 : i32
    return %c0_i32, %c0_i32_0 : i32, i32
  }
  func.func @transform_4(%arg0: i32) -> (i32, i32) {
    %c0_i32 = arith.constant 0 : i32
    %c0_i32_0 = arith.constant 0 : i32
    %c0_i32_1 = arith.constant 0 : i32
    return %c0_i32, %c0_i32_0 : i32, i32
  }
  func.func @transform_5(%arg0: i32) -> (i32, i32) {
    %c0_i32 = arith.constant 0 : i32
    %c0_i32_0 = arith.constant 0 : i32
    return %arg0, %c0_i32 : i32, i32
  }
}

</mosaic_0001>

<bundles_post_ra>
// kernel: tpu_custom_call.1
= control target key start
LH: loop header
LB: loop body
LE: loop exit
PB: predicated region body
PF: predicated region fallthrough
CT: control target
= control target key end

     0   :  { %11 = vsyncpa [#allocation4], 0  ;;  %s289_s0 = inlined_call_operand.hbm [shape: f32[8,32], index: 0, kind: input, shape index: {}]   ;;  %s290_s1 = inlined_call_operand.hbm [shape: f32[32,64], index: 1, kind: input, shape index: {}]   ;;  %s291_s2 = inlined_call_operand.vmem [shape: f32[1,64], index: 2, kind: input, shape index: {}]   ;;  %s292_s3 = inlined_call_operand.vmem [shape: f32[1,64], index: 3, kind: input, shape index: {}]   ;;  %s293_s4 = inlined_call_operand.<no memory space> [shape: f32[1,1], index: 4, kind: input, shape index: {}]   ;;  %s294_s5 = inlined_call_operand.vmem [shape: f32[8,1], index: 5, kind: output, shape index: {}]  }
   0x1   :  { %12 = vsyncpa [#allocation6], 0  ;;  %s235_s18 = smov [#allocation3]   ;;  %s236_s20 = smov [#allocation5]  }
   0x2   :  { %s19_s19 = sshll.u32 %s235_s18, 4  ;;  %s28_s21 = sshll.u32 %s236_s20, 4  ;;  %s20_s19 = int_to_ptr.vmem [resolvable:$true] %s19_s19  ;;  %s29_s21 = int_to_ptr.vmem [resolvable:$true] %s28_s21 }
   0x3   :  { %s199_s22 = scalar_lea.vmem %s20_s19, 128  ;;  %p204_p1 = scmp.lt.s32.totalorder %s20_s19, %s20_s19 }
   0x4   :  { %p200_p0 = scmp.ne.s32.totalorder %s20_s19, %s199_s22  ;;  %p205_p2 = scmp.lt.s32.totalorder %s199_s22, %s199_s22 }
   0x6   :  { %p206_p3 = por %p205_p2, %p204_p1 }
   0x8   :  { %p207_p4 = pnand %p206_p3, %p200_p0 }
   0xa   :  { %210 = shalt.err (!%p207_p4)
}
   0xb   :  { %22 = dma.hbm_to_vmem [thread:$0]  %s289_s0, 128, %s20_s19, [#allocation4]  }
   0xc   :  { %s219_s25 = scalar_lea.vmem %s29_s21, 512  ;;  %p224_p6 = scmp.lt.s32.totalorder %s29_s21, %s29_s21 }
   0xd   :  { %p220_p5 = scmp.ne.s32.totalorder %s29_s21, %s219_s25  ;;  %p225_p7 = scmp.lt.s32.totalorder %s219_s25, %s219_s25 }
   0xf   :  { %p226_p8 = por %p225_p7, %p224_p6 }
  0x11   :  { %p227_p9 = pnand %p226_p8, %p220_p5 }
  0x13   :  { %230 = shalt.err (!%p227_p9)
}
  0x14   :  { %s237_s26 = smov 128   ;;  %s238_s27 = smov 8  }
  0x15   :  { %34 = dma.hbm_to_vmem [thread:$0]  %s290_s1, 512, %s29_s21, [#allocation6], %s237_s26, %s237_s26, %s238_s27  }
  0x16   :  { %231 = dma.done.wait [#allocation4], 128  }
  0x17   :  { %232 = vsyncadd [#allocation4], 4294967168 }
  0x18   :  { %233 = dma.done.wait [#allocation6], 512  }
  0x19   :  { %234 = vsyncadd [#allocation6], 4294966784  ;;  %v239_v0 = vmov 0.0   ;;  %vm240_vm0 = vmmov 0   ;;  %v51_v1 = vld [vmem:[#allocation5 + $0x18] sm:$0xff]  ;;  %v50_v2 = vld [vmem:[#allocation5 + $0x10] sm:$0xff]  ;;  %v147_v14 = vstv %s293_s4 }
  0x1a   :  { %170 = vmatprep.subr.mxu0 %v239_v0  ;;  %178 = vmatprep.mubr.msk.f32.mxu0 %vm240_vm0, %v239_v0  ;;  %v49_v3 = vld [vmem:[#allocation5 + $0x8] sm:$0xff]  ;;  %v48_v4 = vld [vmem:[#allocation5] sm:$0xff]  ;;  %v47_v5 = vld [vmem:[#allocation3] sm:$0xff]  ;;  %vm59_vm1 = vcmask 261120   ;;  %vm142_vm2 = vcmask 523264   ;;  %vm154_vm3 = vcmask 7168  }
  0x1b   :  { %171 = vmatpush3.msra.mxu0 %v51_v1  ;;  %v162_v6 = vld [vmem:[%s291_s2] ss:$0 sm:$0xff] }
  0x1c   :  { %172 = vmatprep.subr.mxu0 %v239_v0  ;;  %v164_v10 = vld [vmem:[%s292_s3] ss:$0 sm:$0xff] }
  0x1d   :  { %173 = vmatpush3.msra.mxu0 %v50_v2 }
  0x1e   :  { %174 = vmatprep.subr.mxu0 %v239_v0 }
  0x1f   :  { %175 = vmatpush3.msra.mxu0 %v49_v3 }
  0x20   :  { %176 = vmatprep.subr.mxu0 %v239_v0 }
  0x21   :  { %177 = vmatpush3.msra.mxu0 %v48_v4 }
  0x22   :  { %179 = vmatmul.mubr.msk.f32.vlgmr.msra.gmra.mxu0 %vm59_vm1, %v47_v5 }
  0xe2   :  { %v129_v7 = vpop.f32.mrf.mxu0 }
  0xe3   :  { %v130_v8 = vadd.f32 %v162_v6, %v129_v7 }
  0xe4   :  { %v180_v9 = vpop.f32.mrf.mxu0 }
  0xe5   :  { %v133_v11 = vmax.f32 %v130_v8, 0.0 }
  0xe7   :  { %v141_v12 = vmul.f32 %v164_v10, %v133_v11 }
  0xe9   :  { %v143_v13 = vsel %vm142_vm2, %v141_v12, 0.0 }
  0xea   :  { %144 = vadd.xlane.f32.xlu0 %v143_v13 }
 0x173   :  { %v145_v15 = vpop.xlane.xlu0 %144 }
 0x174   :  { %v148_v16 = vadd.f32 %v147_v14, %v145_v15 }
 0x176   :  { %v149_v17 = vsub.f32 0.0, %v148_v16 }
 0x178   :  { %v150_v18 = vmul.f32 1.442695, %v149_v17 }
 0x17a   :  { %187 = vpow2.f32 %v150_v18 }
 0x187   :  { %v188_v19 = vpop.eup %187 }
 0x188   :  { %v152_v20 = vadd.f32 1.0, %v188_v19 }
 0x18a   :  { %189 = vrcp.f32 %v152_v20 }
 0x197   :  { %v190_v21 = vpop.eup %189 }
 0x198   :  { %155 = vst.msk [vmem:[%s294_s5] sm:$0xff] %vm154_vm3, %v190_v21 }
 0x199   :  { %160 = vsyncpa [#allocation4], 1 }
 0x19a   :  { %161 = vsyncpa [#allocation6], 1 }

</bundles_post_ra>
